<compile_context>
chip_gen: v7x
topology: tpu7x:2x2x1
jax: 0.10.0
libtpu: 0.0.40
codegen_flags: <defaults>
</compile_context>

<pallas_src>
import jax
import jax.numpy as jnp
from jax.experimental import pallas as pl
from jax.experimental.pallas import tpu as pltpu

EPS = 1e-5


def conv_block_kernel(x_ref, wb1_ref, wb2_ref, g1_ref, be1_ref,
                      g2_ref, be2_ref, fold_ref, bcast_ref, o_ref):
    # x_ref:    (N, H+2, W*Cin)    H-padded input, lanes packed as (w, ci)
    # wb1_ref:  (3, W*Cin,  W*Cout)  banded conv1 weights (one slab per dy)
    # wb2_ref:  (3, W*Cout, W*Cout)  banded conv2 weights
    # g*/be*:   (1, Cout)            BN gamma / beta
    # fold_ref: (W*Cout, Cout)       lane-packed -> per-channel fold matrix
    # bcast_ref:(Cout, W*Cout)       per-channel -> lane-packed broadcast matrix
    # o_ref:    (N*H, W*Cout)        lane-dense output
    N, Hp, _ = x_ref.shape
    H = Hp - 2
    Cout = fold_ref.shape[1]
    WCout = wb1_ref.shape[2]
    W = WCout // Cout
    inv_cnt = 1.0 / float(N * H * W)

    fold = fold_ref[...]
    bcast = bcast_ref[...]

    def conv3x3(xh, wb_ref):
        # xh: (N, H+2, W*C) H-padded, lane-packed.  One fused matmul per dy;
        # W 'same' padding is baked into the banded weights.
        acc = None
        for dy in range(3):
            slab = xh[:, dy:dy + H, :].reshape(N * H, xh.shape[-1])
            part = jnp.dot(slab, wb_ref[dy], preferred_element_type=jnp.float32)
            acc = part if acc is None else acc + part
        return acc  # (N*H, W*Cout)

    def bn_relu(acc, g_ref, be_ref):
        # Training-mode BN over (N,H,W) per channel, computed directly in the
        # lane-packed layout; channel fold/broadcast go through tiny MXU matmuls.
        ch_sum = jnp.dot(jnp.sum(acc, axis=0, keepdims=True), fold,
                         preferred_element_type=jnp.float32)            # (1, Cout)
        mean_c = ch_sum * inv_cnt
        mean_l = jnp.dot(mean_c, bcast, preferred_element_type=jnp.float32)
        d = acc - mean_l
        ch_sqsum = jnp.dot(jnp.sum(d * d, axis=0, keepdims=True), fold,
                           preferred_element_type=jnp.float32)
        var_c = ch_sqsum * inv_cnt                                       # biased var
        scale_c = g_ref[...] * jax.lax.rsqrt(var_c + EPS)                # (1, Cout)
        scale_l = jnp.dot(scale_c, bcast, preferred_element_type=jnp.float32)
        shift_l = jnp.dot(be_ref[...], bcast, preferred_element_type=jnp.float32)
        return jnp.maximum(d * scale_l + shift_l, 0.0)                   # (N*H, W*Cout)

    # ---- conv1 (bias cancelled by BN) + bn1 + relu ----
    x = x_ref[...]
    y1 = bn_relu(conv3x3(x, wb1_ref), g1_ref, be1_ref)

    # ---- H-pad the intermediate (no scratch buffer round-trip) ----
    y1_3d = y1.reshape(N, H, WCout)
    zrow = jnp.zeros((N, 1, WCout), jnp.float32)
    y1h = jnp.concatenate([zrow, y1_3d, zrow], axis=1)        # (N, H+2, W*Cout)

    # ---- conv2 + bn2 + relu ----
    y2 = bn_relu(conv3x3(y1h, wb2_ref), g2_ref, be2_ref)

    o_ref[...] = y2.astype(o_ref.dtype)                       # full-width lane-dense store


def init_params(key, in_c, out_c):
    """Deterministic synthetic parameters (PyTorch shapes)."""
    k1, k2, k3, k4 = jax.random.split(key, 4)
    w1 = 0.1 * jax.random.normal(k1, (out_c, in_c, 3, 3), jnp.float32)   # Conv2d.weight
    w2 = 0.1 * jax.random.normal(k2, (out_c, out_c, 3, 3), jnp.float32)
    b1 = 0.05 * jax.random.normal(k3, (out_c,), jnp.float32)             # Conv2d.bias
    b2 = 0.05 * jax.random.normal(k4, (out_c,), jnp.float32)
    g1 = jnp.ones((out_c,), jnp.float32)    # BN gamma (PyTorch default 1)
    be1 = jnp.zeros((out_c,), jnp.float32)  # BN beta  (PyTorch default 0)
    g2 = jnp.ones((out_c,), jnp.float32)
    be2 = jnp.zeros((out_c,), jnp.float32)
    return dict(w1=w1, b1=b1, g1=g1, be1=be1, w2=w2, b2=b2, g2=g2, be2=be2)


def _band_weights(w_oihw, W):
    """(Cout, Cin, 3, 3) -> (3, W*Cin, W*Cout) banded matrices.

    band[dy][win*Cin + ci, wout*Cout + co] = w[co, ci, dy, win - wout + 1]
    when |win - wout| <= 1, else 0 — the W-direction 'same' padding is encoded
    in the band, so the kernel never pads the lane axis.
    """
    out_c, in_c = w_oihw.shape[0], w_oihw.shape[1]
    wt = jnp.transpose(w_oihw, (2, 3, 1, 0))                  # (dy, dx, Cin, Cout)
    dx = jnp.arange(3)[:, None, None]
    win = jnp.arange(W)[None, :, None]
    wout = jnp.arange(W)[None, None, :]
    sel = (win == wout + dx - 1).astype(jnp.float32)          # (3, W, W)
    band = jnp.einsum('dvw,ydio->yviwo', sel, wt)             # (3, W, Cin, W, Cout)
    return band.reshape(3, W * in_c, W * out_c)


def conv_block_forward(x_nchw, params):
    N, Cin, H, W = x_nchw.shape
    Cout = params["w1"].shape[0]

    # NCHW -> lane-packed (N, H+2, W*Cin): channels ride the 128-lane axis with W;
    # only the H direction is explicitly zero-padded.
    x = jnp.transpose(x_nchw, (0, 2, 3, 1)).astype(jnp.float32)   # (N, H, W, Cin)
    x = x.reshape(N, H, W * Cin)
    x = jnp.pad(x, ((0, 0), (1, 1), (0, 0)))                      # (N, H+2, W*Cin)

    wb1 = _band_weights(params["w1"], W)                          # (3, W*Cin,  W*Cout)
    wb2 = _band_weights(params["w2"], W)                          # (3, W*Cout, W*Cout)

    # NOTE: conv biases (params['b1'], params['b2']) are intentionally not applied:
    # training-mode BatchNorm's mean subtraction cancels a per-channel bias exactly.

    g1 = params["g1"].reshape(1, Cout)
    be1 = params["be1"].reshape(1, Cout)
    g2 = params["g2"].reshape(1, Cout)
    be2 = params["be2"].reshape(1, Cout)

    # fold: lane-packed (w, c) -> per-channel ; bcast: per-channel -> lane-packed
    fold = jnp.tile(jnp.eye(Cout, dtype=jnp.float32), (W, 1))     # (W*Cout, Cout)
    bcast = fold.T                                                # (Cout, W*Cout)

    vmem = pl.BlockSpec(memory_space=pltpu.MemorySpace.VMEM)
    out = pl.pallas_call(
        conv_block_kernel,
        out_shape=jax.ShapeDtypeStruct((N * H, W * Cout), jnp.float32),
        in_specs=[vmem] * 9,
        out_specs=vmem,
    )(x, wb1, wb2, g1, be1, g2, be2, fold, bcast)

    # lane-dense (N*H, W*Cout) -> NCHW
    out_nhwc = out.reshape(N, H, W, Cout)
    return jnp.transpose(out_nhwc, (0, 3, 1, 2))


def _reference_forward(x_nchw, params):
    """Pure-JAX reference (train-mode BN), for an in-script sanity check."""
    def conv(x, w, b):
        y = jax.lax.conv_general_dilated(
            x, w, window_strides=(1, 1), padding=((1, 1), (1, 1)),
            dimension_numbers=("NCHW", "OIHW", "NCHW"))
        return y + b[None, :, None, None]

    def bn_relu(x, g, be):
        mean = jnp.mean(x, axis=(0, 2, 3), keepdims=True)
        var = jnp.mean((x - mean) ** 2, axis=(0, 2, 3), keepdims=True)
        y = (x - mean) * jax.lax.rsqrt(var + EPS) * g[None, :, None, None] \
            + be[None, :, None, None]
        return jnp.maximum(y, 0.0)

    x = bn_relu(conv(x_nchw, params["w1"], params["b1"]), params["g1"], params["be1"])
    x = bn_relu(conv(x, params["w2"], params["b2"]), params["g2"], params["be2"])
    return x


if __name__ == "__main__":
    key = jax.random.PRNGKey(0)
    kx, kp = jax.random.split(key)

    N, in_c, out_c, H, W = 2, 4, 8, 16, 16
    x = jax.random.normal(kx, (N, in_c, H, W), jnp.float32)
    params = init_params(kp, in_c, out_c)

    out = conv_block_forward(x, params)
    jax.block_until_ready(out)
    assert out.shape == (N, out_c, H, W)

    ref = _reference_forward(x, params)
    max_err = float(jnp.max(jnp.abs(out - ref)))
    assert max_err < 5e-2, f"max abs err vs reference: {max_err}"

    print("KERNEL_OK")
</pallas_src>

<mosaic_0001>
module attributes {stable_mosaic.version = 11 : i64} {
  func.func @conv_block_kernel(%arg0: memref<2x18x64xf32, #tpu.memory_space<vmem>>, %arg1: memref<3x64x128xf32, #tpu.memory_space<vmem>>, %arg2: memref<3x128x128xf32, #tpu.memory_space<vmem>>, %arg3: memref<1x8xf32, #tpu.memory_space<vmem>>, %arg4: memref<1x8xf32, #tpu.memory_space<vmem>>, %arg5: memref<1x8xf32, #tpu.memory_space<vmem>>, %arg6: memref<1x8xf32, #tpu.memory_space<vmem>>, %arg7: memref<128x8xf32, #tpu.memory_space<vmem>>, %arg8: memref<8x128xf32, #tpu.memory_space<vmem>>, %arg9: memref<32x128xf32, #tpu.memory_space<vmem>>) attributes {dimension_semantics = [], scalar_prefetch = 0 : i64, scratch_operands = 0 : i64, tpu.core_type = #tpu.core_type<tc>} {
    %c0 = arith.constant 0 : index
    %c0_0 = arith.constant 0 : index
    %0 = vector.load %arg7[%c0, %c0_0] : memref<128x8xf32, #tpu.memory_space<vmem>>, vector<128x8xf32>
    %c0_1 = arith.constant 0 : index
    %c0_2 = arith.constant 0 : index
    %1 = vector.load %arg8[%c0_1, %c0_2] : memref<8x128xf32, #tpu.memory_space<vmem>>, vector<8x128xf32>
    %c0_3 = arith.constant 0 : index
    %c0_4 = arith.constant 0 : index
    %c0_5 = arith.constant 0 : index
    %2 = vector.load %arg0[%c0_3, %c0_4, %c0_5] : memref<2x18x64xf32, #tpu.memory_space<vmem>>, vector<2x18x64xf32>
    %3 = vector.extract_strided_slice %2 {offsets = [0, 0, 0], sizes = [2, 16, 64], strides = [1, 1, 1]} : vector<2x18x64xf32> to vector<2x16x64xf32>
    %4 = vector.shape_cast %3 : vector<2x16x64xf32> to vector<32x64xf32>
    %c0_6 = arith.constant 0 : index
    %c0_7 = arith.constant 0 : index
    %c0_8 = arith.constant 0 : index
    %5 = vector.load %arg1[%c0_6, %c0_7, %c0_8] : memref<3x64x128xf32, #tpu.memory_space<vmem>>, vector<1x64x128xf32>
    %6 = vector.shape_cast %5 : vector<1x64x128xf32> to vector<64x128xf32>
    %cst = arith.constant dense<0.000000e+00> : vector<32x128xf32>
    %7 = tpu.matmul %4, %6, %cst {dimension_numbers = #tpu.dot_dimension_numbers<[1], [0], [0], [1], [0, 0, 1, 1], [], []>} : vector<32x64xf32>, vector<64x128xf32>, vector<32x128xf32> -> vector<32x128xf32>
    %8 = vector.extract_strided_slice %2 {offsets = [0, 1, 0], sizes = [2, 16, 64], strides = [1, 1, 1]} : vector<2x18x64xf32> to vector<2x16x64xf32>
    %9 = vector.shape_cast %8 : vector<2x16x64xf32> to vector<32x64xf32>
    %c1 = arith.constant 1 : index
    %c0_9 = arith.constant 0 : index
    %c0_10 = arith.constant 0 : index
    %10 = vector.load %arg1[%c1, %c0_9, %c0_10] : memref<3x64x128xf32, #tpu.memory_space<vmem>>, vector<1x64x128xf32>
    %11 = vector.shape_cast %10 : vector<1x64x128xf32> to vector<64x128xf32>
    %cst_11 = arith.constant dense<0.000000e+00> : vector<32x128xf32>
    %12 = tpu.matmul %9, %11, %cst_11 {dimension_numbers = #tpu.dot_dimension_numbers<[1], [0], [0], [1], [0, 0, 1, 1], [], []>} : vector<32x64xf32>, vector<64x128xf32>, vector<32x128xf32> -> vector<32x128xf32>
    %13 = arith.addf %7, %12 : vector<32x128xf32>
    %14 = vector.extract_strided_slice %2 {offsets = [0, 2, 0], sizes = [2, 16, 64], strides = [1, 1, 1]} : vector<2x18x64xf32> to vector<2x16x64xf32>
    %15 = vector.shape_cast %14 : vector<2x16x64xf32> to vector<32x64xf32>
    %c2 = arith.constant 2 : index
    %c0_12 = arith.constant 0 : index
    %c0_13 = arith.constant 0 : index
    %16 = vector.load %arg1[%c2, %c0_12, %c0_13] : memref<3x64x128xf32, #tpu.memory_space<vmem>>, vector<1x64x128xf32>
    %17 = vector.shape_cast %16 : vector<1x64x128xf32> to vector<64x128xf32>
    %cst_14 = arith.constant dense<0.000000e+00> : vector<32x128xf32>
    %18 = tpu.matmul %15, %17, %cst_14 {dimension_numbers = #tpu.dot_dimension_numbers<[1], [0], [0], [1], [0, 0, 1, 1], [], []>} : vector<32x64xf32>, vector<64x128xf32>, vector<32x128xf32> -> vector<32x128xf32>
    %19 = arith.addf %13, %18 : vector<32x128xf32>
    %cst_15 = arith.constant dense<0.000000e+00> : vector<128xf32>
    %20 = vector.multi_reduction <add>, %19, %cst_15 [0] : vector<32x128xf32> to vector<128xf32>
    %21 = vector.shape_cast %20 : vector<128xf32> to vector<1x128xf32>
    %cst_16 = arith.constant dense<0.000000e+00> : vector<1x8xf32>
    %22 = tpu.matmul %21, %0, %cst_16 {dimension_numbers = #tpu.dot_dimension_numbers<[1], [0], [0], [1], [0, 0, 1, 1], [], []>} : vector<1x128xf32>, vector<128x8xf32>, vector<1x8xf32> -> vector<1x8xf32>
    %cst_17 = arith.constant 0.001953125 : f32
    %23 = vector.broadcast %cst_17 : f32 to vector<1x8xf32>
    %24 = arith.mulf %22, %23 : vector<1x8xf32>
    %cst_18 = arith.constant dense<0.000000e+00> : vector<1x128xf32>
    %25 = tpu.matmul %24, %1, %cst_18 {dimension_numbers = #tpu.dot_dimension_numbers<[1], [0], [0], [1], [0, 0, 1, 1], [], []>} : vector<1x8xf32>, vector<8x128xf32>, vector<1x128xf32> -> vector<1x128xf32>
    %26 = vector.broadcast %25 : vector<1x128xf32> to vector<32x128xf32>
    %27 = arith.subf %19, %26 : vector<32x128xf32>
    %28 = arith.mulf %27, %27 : vector<32x128xf32>
    %cst_19 = arith.constant dense<0.000000e+00> : vector<128xf32>
    %29 = vector.multi_reduction <add>, %28, %cst_19 [0] : vector<32x128xf32> to vector<128xf32>
    %30 = vector.shape_cast %29 : vector<128xf32> to vector<1x128xf32>
    %cst_20 = arith.constant dense<0.000000e+00> : vector<1x8xf32>
    %31 = tpu.matmul %30, %0, %cst_20 {dimension_numbers = #tpu.dot_dimension_numbers<[1], [0], [0], [1], [0, 0, 1, 1], [], []>} : vector<1x128xf32>, vector<128x8xf32>, vector<1x8xf32> -> vector<1x8xf32>
    %cst_21 = arith.constant 0.001953125 : f32
    %32 = vector.broadcast %cst_21 : f32 to vector<1x8xf32>
    %33 = arith.mulf %31, %32 : vector<1x8xf32>
    %c0_22 = arith.constant 0 : index
    %c0_23 = arith.constant 0 : index
    %34 = vector.load %arg3[%c0_22, %c0_23] : memref<1x8xf32, #tpu.memory_space<vmem>>, vector<1x8xf32>
    %cst_24 = arith.constant 9.99999974E-6 : f32
    %35 = vector.broadcast %cst_24 : f32 to vector<1x8xf32>
    %36 = arith.addf %33, %35 : vector<1x8xf32>
    %37 = math.rsqrt %36 : vector<1x8xf32>
    %38 = arith.mulf %34, %37 : vector<1x8xf32>
    %cst_25 = arith.constant dense<0.000000e+00> : vector<1x128xf32>
    %39 = tpu.matmul %38, %1, %cst_25 {dimension_numbers = #tpu.dot_dimension_numbers<[1], [0], [0], [1], [0, 0, 1, 1], [], []>} : vector<1x8xf32>, vector<8x128xf32>, vector<1x128xf32> -> vector<1x128xf32>
    %c0_26 = arith.constant 0 : index
    %c0_27 = arith.constant 0 : index
    %40 = vector.load %arg4[%c0_26, %c0_27] : memref<1x8xf32, #tpu.memory_space<vmem>>, vector<1x8xf32>
    %cst_28 = arith.constant dense<0.000000e+00> : vector<1x128xf32>
    %41 = tpu.matmul %40, %1, %cst_28 {dimension_numbers = #tpu.dot_dimension_numbers<[1], [0], [0], [1], [0, 0, 1, 1], [], []>} : vector<1x8xf32>, vector<8x128xf32>, vector<1x128xf32> -> vector<1x128xf32>
    %42 = vector.broadcast %39 : vector<1x128xf32> to vector<32x128xf32>
    %43 = arith.mulf %27, %42 : vector<32x128xf32>
    %44 = vector.broadcast %41 : vector<1x128xf32> to vector<32x128xf32>
    %45 = arith.addf %43, %44 : vector<32x128xf32>
    %cst_29 = arith.constant 0.000000e+00 : f32
    %46 = vector.broadcast %cst_29 : f32 to vector<32x128xf32>
    %47 = arith.maximumf %45, %46 : vector<32x128xf32>
    %48 = vector.shape_cast %47 : vector<32x128xf32> to vector<2x16x128xf32>
    %cst_30 = arith.constant 0.000000e+00 : f32
    %49 = vector.broadcast %cst_30 : f32 to vector<2x1x128xf32>
    %50 = tpu.concatenate %49, %48, %49 in 1 : vector<2x1x128xf32>, vector<2x16x128xf32>, vector<2x1x128xf32> -> vector<2x18x128xf32>
    %51 = vector.extract_strided_slice %50 {offsets = [0, 0, 0], sizes = [2, 16, 128], strides = [1, 1, 1]} : vector<2x18x128xf32> to vector<2x16x128xf32>
    %52 = vector.shape_cast %51 : vector<2x16x128xf32> to vector<32x128xf32>
    %c0_31 = arith.constant 0 : index
    %c0_32 = arith.constant 0 : index
    %c0_33 = arith.constant 0 : index
    %53 = vector.load %arg2[%c0_31, %c0_32, %c0_33] : memref<3x128x128xf32, #tpu.memory_space<vmem>>, vector<1x128x128xf32>
    %54 = vector.shape_cast %53 : vector<1x128x128xf32> to vector<128x128xf32>
    %cst_34 = arith.constant dense<0.000000e+00> : vector<32x128xf32>
    %55 = tpu.matmul %52, %54, %cst_34 {dimension_numbers = #tpu.dot_dimension_numbers<[1], [0], [0], [1], [0, 0, 1, 1], [], []>} : vector<32x128xf32>, vector<128x128xf32>, vector<32x128xf32> -> vector<32x128xf32>
    %56 = vector.extract_strided_slice %50 {offsets = [0, 1, 0], sizes = [2, 16, 128], strides = [1, 1, 1]} : vector<2x18x128xf32> to vector<2x16x128xf32>
    %57 = vector.shape_cast %56 : vector<2x16x128xf32> to vector<32x128xf32>
    %c1_35 = arith.constant 1 : index
    %c0_36 = arith.constant 0 : index
    %c0_37 = arith.constant 0 : index
    %58 = vector.load %arg2[%c1_35, %c0_36, %c0_37] : memref<3x128x128xf32, #tpu.memory_space<vmem>>, vector<1x128x128xf32>
    %59 = vector.shape_cast %58 : vector<1x128x128xf32> to vector<128x128xf32>
    %cst_38 = arith.constant dense<0.000000e+00> : vector<32x128xf32>
    %60 = tpu.matmul %57, %59, %cst_38 {dimension_numbers = #tpu.dot_dimension_numbers<[1], [0], [0], [1], [0, 0, 1, 1], [], []>} : vector<32x128xf32>, vector<128x128xf32>, vector<32x128xf32> -> vector<32x128xf32>
    %61 = arith.addf %55, %60 : vector<32x128xf32>
    %62 = vector.extract_strided_slice %50 {offsets = [0, 2, 0], sizes = [2, 16, 128], strides = [1, 1, 1]} : vector<2x18x128xf32> to vector<2x16x128xf32>
    %63 = vector.shape_cast %62 : vector<2x16x128xf32> to vector<32x128xf32>
    %c2_39 = arith.constant 2 : index
    %c0_40 = arith.constant 0 : index
    %c0_41 = arith.constant 0 : index
    %64 = vector.load %arg2[%c2_39, %c0_40, %c0_41] : memref<3x128x128xf32, #tpu.memory_space<vmem>>, vector<1x128x128xf32>
    %65 = vector.shape_cast %64 : vector<1x128x128xf32> to vector<128x128xf32>
    %cst_42 = arith.constant dense<0.000000e+00> : vector<32x128xf32>
    %66 = tpu.matmul %63, %65, %cst_42 {dimension_numbers = #tpu.dot_dimension_numbers<[1], [0], [0], [1], [0, 0, 1, 1], [], []>} : vector<32x128xf32>, vector<128x128xf32>, vector<32x128xf32> -> vector<32x128xf32>
    %67 = arith.addf %61, %66 : vector<32x128xf32>
    %cst_43 = arith.constant dense<0.000000e+00> : vector<128xf32>
    %68 = vector.multi_reduction <add>, %67, %cst_43 [0] : vector<32x128xf32> to vector<128xf32>
    %69 = vector.shape_cast %68 : vector<128xf32> to vector<1x128xf32>
    %cst_44 = arith.constant dense<0.000000e+00> : vector<1x8xf32>
    %70 = tpu.matmul %69, %0, %cst_44 {dimension_numbers = #tpu.dot_dimension_numbers<[1], [0], [0], [1], [0, 0, 1, 1], [], []>} : vector<1x128xf32>, vector<128x8xf32>, vector<1x8xf32> -> vector<1x8xf32>
    %cst_45 = arith.constant 0.001953125 : f32
    %71 = vector.broadcast %cst_45 : f32 to vector<1x8xf32>
    %72 = arith.mulf %70, %71 : vector<1x8xf32>
    %cst_46 = arith.constant dense<0.000000e+00> : vector<1x128xf32>
    %73 = tpu.matmul %72, %1, %cst_46 {dimension_numbers = #tpu.dot_dimension_numbers<[1], [0], [0], [1], [0, 0, 1, 1], [], []>} : vector<1x8xf32>, vector<8x128xf32>, vector<1x128xf32> -> vector<1x128xf32>
    %74 = vector.broadcast %73 : vector<1x128xf32> to vector<32x128xf32>
    %75 = arith.subf %67, %74 : vector<32x128xf32>
    %76 = arith.mulf %75, %75 : vector<32x128xf32>
    %cst_47 = arith.constant dense<0.000000e+00> : vector<128xf32>
    %77 = vector.multi_reduction <add>, %76, %cst_47 [0] : vector<32x128xf32> to vector<128xf32>
    %78 = vector.shape_cast %77 : vector<128xf32> to vector<1x128xf32>
    %cst_48 = arith.constant dense<0.000000e+00> : vector<1x8xf32>
    %79 = tpu.matmul %78, %0, %cst_48 {dimension_numbers = #tpu.dot_dimension_numbers<[1], [0], [0], [1], [0, 0, 1, 1], [], []>} : vector<1x128xf32>, vector<128x8xf32>, vector<1x8xf32> -> vector<1x8xf32>
    %cst_49 = arith.constant 0.001953125 : f32
    %80 = vector.broadcast %cst_49 : f32 to vector<1x8xf32>
    %81 = arith.mulf %79, %80 : vector<1x8xf32>
    %c0_50 = arith.constant 0 : index
    %c0_51 = arith.constant 0 : index
    %82 = vector.load %arg5[%c0_50, %c0_51] : memref<1x8xf32, #tpu.memory_space<vmem>>, vector<1x8xf32>
    %cst_52 = arith.constant 9.99999974E-6 : f32
    %83 = vector.broadcast %cst_52 : f32 to vector<1x8xf32>
    %84 = arith.addf %81, %83 : vector<1x8xf32>
    %85 = math.rsqrt %84 : vector<1x8xf32>
    %86 = arith.mulf %82, %85 : vector<1x8xf32>
    %cst_53 = arith.constant dense<0.000000e+00> : vector<1x128xf32>
    %87 = tpu.matmul %86, %1, %cst_53 {dimension_numbers = #tpu.dot_dimension_numbers<[1], [0], [0], [1], [0, 0, 1, 1], [], []>} : vector<1x8xf32>, vector<8x128xf32>, vector<1x128xf32> -> vector<1x128xf32>
    %c0_54 = arith.constant 0 : index
    %c0_55 = arith.constant 0 : index
    %88 = vector.load %arg6[%c0_54, %c0_55] : memref<1x8xf32, #tpu.memory_space<vmem>>, vector<1x8xf32>
    %cst_56 = arith.constant dense<0.000000e+00> : vector<1x128xf32>
    %89 = tpu.matmul %88, %1, %cst_56 {dimension_numbers = #tpu.dot_dimension_numbers<[1], [0], [0], [1], [0, 0, 1, 1], [], []>} : vector<1x8xf32>, vector<8x128xf32>, vector<1x128xf32> -> vector<1x128xf32>
    %90 = vector.broadcast %87 : vector<1x128xf32> to vector<32x128xf32>
    %91 = arith.mulf %75, %90 : vector<32x128xf32>
    %92 = vector.broadcast %89 : vector<1x128xf32> to vector<32x128xf32>
    %93 = arith.addf %91, %92 : vector<32x128xf32>
    %cst_57 = arith.constant 0.000000e+00 : f32
    %94 = vector.broadcast %cst_57 : f32 to vector<32x128xf32>
    %95 = arith.maximumf %93, %94 : vector<32x128xf32>
    %c0_58 = arith.constant 0 : index
    %c0_59 = arith.constant 0 : index
    %96 = vector.load %arg9[%c0_58, %c0_59] : memref<32x128xf32, #tpu.memory_space<vmem>>, vector<32x128xf32>
    tpu.vector_store %arg9[%c0_58, %c0_59], %95 {strides = array<i32>} : memref<32x128xf32, #tpu.memory_space<vmem>>, vector<32x128xf32>,
    return
  }
}

</mosaic_0001>

<bundles_post_ra>
// kernel: tpu_custom_call.1
= control target key start
LH: loop header
LB: loop body
LE: loop exit
PB: predicated region body
PF: predicated region fallthrough
CT: control target
= control target key end

     0   :  { %14 = vsyncpa [#allocation3], 0  ;;  %s2986_s0 = inlined_call_operand.vmem [shape: f32[2,18,64], index: 0, kind: input, shape index: {}]   ;;  %s2987_s1 = inlined_call_operand.vmem [shape: f32[3,64,128], index: 1, kind: input, shape index: {}]   ;;  %s2988_s2 = inlined_call_operand.hbm [shape: f32[3,128,128], index: 2, kind: input, shape index: {}]   ;;  %s2989_s3 = inlined_call_operand.vmem [shape: f32[1,8], index: 3, kind: input, shape index: {}]   ;;  %s2990_s4 = inlined_call_operand.vmem [shape: f32[1,8], index: 4, kind: input, shape index: {}]   ;;  %s2991_s5 = inlined_call_operand.vmem [shape: f32[1,8], index: 5, kind: input, shape index: {}]   ;;  %s2992_s6 = inlined_call_operand.vmem [shape: f32[1,8], index: 6, kind: input, shape index: {}]   ;;  %s2993_s7 = inlined_call_operand.vmem [shape: f32[128,8], index: 7, kind: input, shape index: {}]   ;;  %s2994_s8 = inlined_call_operand.vmem [shape: f32[8,128], index: 8, kind: input, shape index: {}]   ;;  %s2995_s9 = inlined_call_operand.hbm [shape: f32[32,128], index: 9, kind: output, shape index: {}]  }
   0x1   :  { %15 = vsyncpa [#allocation4], 0  ;;  %s2503_s30 = smov [#allocation2]   ;;  %s2455_s13 = scalar_lea.hbm %s2988_s2, 6144 }
   0x2   :  { %s25_s10 = sshll.u32 %s2503_s30, 4  ;;  %p2456_p0 = scmp.ne.s32.totalorder %s2988_s2, %s2455_s13  ;;  %s26_s10 = int_to_ptr.vmem [resolvable:$true] %s25_s10 }
   0x3   :  { %p2459_p1 = scmp.lt.u32.totalorder %s2455_s13, %s2988_s2 }
   0x5   :  { %p2461_p2 = pnand %p2459_p1, %p2456_p0 }
   0x7   :  { %2464 = shalt.err (!%p2461_p2)
}
   0x8   :  { %s2465_s18 = scalar_lea.vmem %s26_s10, 6144  ;;  %p2470_p4 = scmp.lt.s32.totalorder %s26_s10, %s26_s10 }
   0x9   :  { %p2466_p3 = scmp.ne.s32.totalorder %s26_s10, %s2465_s18  ;;  %p2471_p5 = scmp.lt.s32.totalorder %s2465_s18, %s2465_s18 }
   0xb   :  { %p2472_p6 = por %p2471_p5, %p2470_p4 }
   0xd   :  { %p2473_p7 = pnand %p2472_p6, %p2466_p3 }
   0xf   :  { %2476 = shalt.err (!%p2473_p7)
}
  0x10   :  { %s2504_s19 = smov 128   ;;  %s2505_s20 = smov 8  }
  0x11   :  { %31 = dma.hbm_to_vmem [thread:$0]  %s2988_s2, 6144, %s26_s10, [#allocation3], %s2504_s19, %s2504_s19, %s2505_s20  }
  0x12   :  { %2499 = dma.done.wait [#allocation3], 6144  }
  0x13   :  { %2500 = vsyncadd [#allocation3], 4294961152  ;;  %v2506_v0 = vmov 0.0|0.0   ;;  %v1624_v1 = vld [vmem:[%s2987_s1 + $0x40] sm:$0xff]  ;;  %v1625_v2 = vld [vmem:[%s2987_s1 + $0x48] sm:$0xff]  ;;  %vm84_vm0 = vcmask 1046528  }
  0x14   :  { %2236 = vmatprep.subr.bf16.mxu1 %v2506_v0  ;;  %v1626_v3 = vld [vmem:[%s2987_s1 + $0x50] sm:$0xff]  ;;  %v2188_v4 = vpack.c.bf16 %v1625_v2, %v1624_v1  ;;  %v1627_v5 = vld [vmem:[%s2987_s1 + $0x58] sm:$0xff]  ;;  %v1628_v7 = vld [vmem:[%s2987_s1 + $0x60] sm:$0xff]  ;;  %vm104_vm1 = vcmask 523264   ;;  %vm291_vm2 = vcmask 1045504   ;;  %vm2507_vm3 = vmmov 0  }
  0x15   :  { %v2192_v6 = vpack.c.bf16 %v1627_v5, %v1626_v3  ;;  %v1629_v8 = vld [vmem:[%s2987_s1 + $0x68] sm:$0xff]  ;;  %v2597_v9 = vld [vmem:[%s2986_s0] sm:$0xff]  ;;  %v1630_v14 = vld [vmem:[%s2987_s1 + $0x70] sm:$0xff]  ;;  %vm488_vm4 = vcmask 64512   ;;  %vm829_vm5 = vcmask 1040384  }
  0x16   :  { %2189 = vmatprep.subr.bf16.mxu0 %v2188_v4  ;;  %v2602_v10 = vld [vmem:[%s2986_s0 + $0x8] sm:$0xff]  ;;  %v85_v11 = vrot.slane %v2597_v9, 1  ;;  %v2196_v13 = vpack.c.bf16 %v1629_v8, %v1628_v7  ;;  %v1631_v15 = vld [vmem:[%s2987_s1 + $0x78] sm:$0xff]  ;;  %v70_v17 = vld [vmem:[%s2987_s1] sm:$0xff]  ;;  %v292_v56 = vrot.slane %v2597_v9, 2 }
  0x17   :  { %2191 = vmatpush3.bf16.msra.mxu0 %v2188_v4  ;;  %v86_v12 = vrot.slane %v2602_v10, 1  ;;  %v71_v18 = vld [vmem:[%s2987_s1 + $0x8] sm:$0xff]  ;;  %v2200_v19 = vpack.c.bf16 %v1631_v15, %v1630_v14  ;;  %v2623_v20 = vld [vmem:[%s2986_s0 + $0x10] sm:$0x3]  ;;  %v2628_v21 = vld [vmem:[%s2986_s0 + $0x18] sm:$0xff]  ;;  %v293_v57 = vrot.slane %v2602_v10, 2 }
  0x18   :  { %2193 = vmatprep.subr.bf16.mxu0 %v2192_v6  ;;  %v2633_v22 = vld [vmem:[%s2986_s0 + $0x20] sm:$0xff]  ;;  %v48_v24 = vld [vmem:[%s2993_s7 + $0x8] sm:$0xff]  ;;  %v49_v25 = vld [vmem:[%s2993_s7 + $0x10] sm:$0xff]  ;;  %v88_v28 = vrot.slane %v2623_v20, 1  ;;  %v2204_v29 = vpack.c.bf16 %v71_v18, %v70_v17  ;;  %v90_v31 = vrot.slane %v2628_v21, 1  ;;  %v295_v2 = vrot.slane %v2623_v20, 2 }
  0x19   :  { %v87_v16 = vsel %vm84_vm0, %v85_v11, %v86_v12  ;;  %v47_v23 = vld [vmem:[%s2993_s7] sm:$0xff]  ;;  %v50_v27 = vld [vmem:[%s2993_s7 + $0x18] sm:$0xff]  ;;  %v72_v30 = vld [vmem:[%s2987_s1 + $0x10] sm:$0xff]  ;;  %v91_v32 = vrot.slane %v2633_v22, 1  ;;  %v294_v61 = vsel %vm291_vm2, %v292_v56, %v293_v57  ;;  %v297_v3 = vrot.slane %v2628_v21, 2 }
  0x1a   :  { %1854 = vmatprep.mubr.msk.f32.mxu0 %vm104_vm1, %v87_v16  ;;  %v2644_v26 = vpack.c.bf16 %v48_v24, %v47_v23  ;;  %v2658_v33 = vld [vmem:[%s2986_s0 + $0x28] sm:$0x3]  ;;  %v2661_v34 = vpack.c.bf16 %v50_v27, %v49_v25  ;;  %v73_v35 = vld [vmem:[%s2987_s1 + $0x18] sm:$0xff]  ;;  %v51_v36 = vld [vmem:[%s2993_s7 + $0x20] sm:$0xff]  ;;  %v89_v38 = vsel %vm84_vm0, %v86_v12, %v88_v28  ;;  %v298_v4 = vrot.slane %v2633_v22, 2 }
  0x1b   :  { %2195 = vmatpush3.bf16.msra.mxu0 %v2192_v6  ;;  %v52_v37 = vld [vmem:[%s2993_s7 + $0x28] sm:$0xff]  ;;  %v93_v39 = vrot.slane %v2658_v33, 1  ;;  %v2208_v40 = vpack.c.bf16 %v73_v35, %v72_v30  ;;  %v92_v41 = vsel %vm84_vm0, %v90_v31, %v91_v32  ;;  %v74_v43 = vld [vmem:[%s2987_s1 + $0x20] sm:$0xff]  ;;  %v76_v47 = vld [vmem:[%s2987_s1 + $0x30] sm:$0xff]  ;;  %v296_v5 = vsel %vm291_vm2, %v293_v57, %v295_v2 }
  0x1c   :  { %2197 = vmatprep.subr.bf16.mxu0 %v2196_v13  ;;  %2238 = vmatpush3.bf16.msra.mxu1 %v2644_v26  ;;  %v2677_v42 = vpack.c.bf16 %v52_v37, %v51_v36  ;;  %v75_v44 = vld [vmem:[%s2987_s1 + $0x28] sm:$0xff]  ;;  %v77_v48 = vld [vmem:[%s2987_s1 + $0x38] sm:$0xff]  ;;  %v1640_v50 = vld [vmem:[%s2987_s1 + $0x80] sm:$0xff]  ;;  %v300_v6 = vrot.slane %v2658_v33, 2  ;;  %v299_v7 = vsel %vm291_vm2, %v297_v3, %v298_v4  ;;  %v2508_v24 = vmov 0.0  }
  0x1d   :  { %2239 = vmatprep.subr.bf16.mxu1 %v2506_v0  ;;  %v94_v45 = vsel %vm84_vm0, %v91_v32, %v93_v39  ;;  %v2212_v46 = vpack.c.bf16 %v75_v44, %v74_v43  ;;  %v2216_v49 = vpack.c.bf16 %v77_v48, %v76_v47  ;;  %v1641_v51 = vld [vmem:[%s2987_s1 + $0x88] sm:$0xff]  ;;  %v1642_v53 = vld [vmem:[%s2987_s1 + $0x90] sm:$0xff]  ;;  %v1643_v54 = vld [vmem:[%s2987_s1 + $0x98] sm:$0xff]  ;;  %1936 = vmatprep.mubr.msk.f32.mxu1 %vm2507_vm3, %v2508_v24 }
  0x1e   :  { %v2220_v52 = vpack.c.bf16 %v1641_v51, %v1640_v50  ;;  %v2224_v55 = vpack.c.bf16 %v1643_v54, %v1642_v53  ;;  %v1644_v58 = vld [vmem:[%s2987_s1 + $0xa0] sm:$0xff]  ;;  %v1645_v59 = vld [vmem:[%s2987_s1 + $0xa8] sm:$0xff]  ;;  %v1646_v62 = vld [vmem:[%s2987_s1 + $0xb0] sm:$0xff]  ;;  %v301_v8 = vsel %vm291_vm2, %v298_v4, %v300_v6 }
  0x1f   :  { %2199 = vmatpush3.bf16.msra.mxu0 %v2196_v13  ;;  %v2228_v60 = vpack.c.bf16 %v1645_v59, %v1644_v58  ;;  %v1647_v63 = vld [vmem:[%s2987_s1 + $0xb8] sm:$0xff]  ;;  %v55_v12 = vld [vmem:[%s2993_s7 + $0x40] sm:$0xff]  ;;  %v56_v13 = vld [vmem:[%s2993_s7 + $0x48] sm:$0xff] }
  0x20   :  { %2201 = vmatprep.subr.bf16.mxu0 %v2200_v19  ;;  %2241 = vmatpush3.bf16.msra.mxu1 %v2661_v34  ;;  %v2232_v1 = vpack.c.bf16 %v1647_v63, %v1646_v62  ;;  %v2760_v14 = vpack.c.bf16 %v56_v13, %v55_v12  ;;  %v57_v15 = vld [vmem:[%s2993_s7 + $0x50] sm:$0xff]  ;;  %v58_v16 = vld [vmem:[%s2993_s7 + $0x58] sm:$0xff]  ;;  %v59_v18 = vld [vmem:[%s2993_s7 + $0x60] sm:$0xff] }
  0x21   :  { %2242 = vmatprep.subr.bf16.mxu1 %v2506_v0  ;;  %v2770_v17 = vpack.c.bf16 %v58_v16, %v57_v15  ;;  %v882_v6 = vld [vmem:[#allocation2 + $0x88] sm:$0xff]  ;;  %v885_v12 = vld [vmem:[#allocation2 + $0xa0] sm:$0xff]  ;;  %v887_v16 = vld [vmem:[#allocation2 + $0xb0] sm:$0xff] }
  0x22   :  { %v886_v13 = vld [vmem:[#allocation2 + $0xa8] sm:$0xff]  ;;  %vm2913_vm6 = vmneg %vm829_vm5 }
  0x23   :  { %2203 = vmatpush3.bf16.msra.mxu0 %v2200_v19  ;;  %v60_v19 = vld [vmem:[%s2993_s7 + $0x68] sm:$0xff]  ;;  %v2292_v15 = vpack.c.bf16 %v886_v13, %v885_v12 }
  0x24   :  { %2205 = vmatprep.subr.bf16.mxu0 %v2204_v29  ;;  %2244 = vmatpush3.bf16.msra.mxu1 %v2677_v42  ;;  %v2780_v20 = vpack.c.bf16 %v60_v19, %v59_v18  ;;  %v888_v18 = vld [vmem:[#allocation2 + $0xb8] sm:$0xff] }
  0x25   :  { %2245 = vmatprep.subr.bf16.mxu1 %v2506_v0  ;;  %v2296_v19 = vpack.c.bf16 %v888_v18, %v887_v16 }
  0x26   :  { %1855 = vmatmul.mubr.msk.f32.vlgmr.msra.gmra.mrb[0].mxu0 %vm104_vm1, %v89_v38 }
  0x27   :  { %2207 = vmatpush3.bf16.msra.mxu0 %v2204_v29  ;;  %1857 = vmatprep.mubr.msk.f32.mxu0 %vm104_vm1, %v92_v41 }
  0x28   :  { %2209 = vmatprep.subr.bf16.mxu0 %v2208_v40 }
  0x2a   :  { %1858 = vmatmul.mubr.msk.f32.gmra.mrb[2].mxu0 %vm104_vm1, %v94_v45  ;;  %v562_v45 = vlaneseq }
  0x2b   :  { %2211 = vmatpush3.bf16.msra.mxu0 %v2208_v40  ;;  %1876 = vmatprep.mubr.msk.f32.mxu0 %vm104_vm1, %v2597_v9  ;;  %v53_v9 = vld [vmem:[%s2993_s7 + $0x30] sm:$0xff]  ;;  %v2799_v40 = vld [vmem:[%s2994_s8] sm:$0xff] }
  0x2c   :  { %2213 = vmatprep.subr.bf16.mxu0 %v2212_v46 }
  0x2f   :  { %2215 = vmatpush3.bf16.msra.mxu0 %v2212_v46  ;;  %v563_v46 = vshrl.u32 %v562_v45, 7  ;;  %v896_v45 = vld [vmem:[#allocation2 + $0xf8] sm:$0xff] }
  0x30   :  { %2217 = vmatprep.subr.bf16.mxu0 %v2216_v49 }
  0x31   :  { %v2824_v47 = vsub.s32 0, %v563_v46 }
  0x33   :  { %2219 = vmatpush3.bf16.msra.mxu0 %v2216_v49 }
  0x34   :  { %2221 = vmatprep.subr.bf16.mxu0 %v2220_v52 }
  0x36   :  { %1877 = vmatmul.mubr.msk.f32.vlgmr.msra.gmra.mrb[0].mxu0 %vm104_vm1, %v2602_v10  ;;  %v54_v10 = vld [vmem:[%s2993_s7 + $0x38] sm:$0xff] }
  0x37   :  { %2223 = vmatpush3.bf16.msra.mxu0 %v2220_v52  ;;  %1879 = vmatprep.mubr.msk.f32.mxu0 %vm104_vm1, %v2628_v21  ;;  %v2750_v11 = vpack.c.bf16 %v54_v10, %v53_v9  ;;  %v61_v21 = vld [vmem:[%s2993_s7 + $0x70] sm:$0xff]  ;;  %v884_v9 = vld [vmem:[#allocation2 + $0x98] sm:$0xff] }
  0x38   :  { %2225 = vmatprep.subr.bf16.mxu0 %v2224_v55 }
  0x39   :  { %2247 = vmatpush3.bf16.msra.mxu1 %v2750_v11 }
  0x3a   :  { %1880 = vmatmul.mubr.msk.f32.gmra.mrb[2].mxu0 %vm104_vm1, %v2633_v22  ;;  %2248 = vmatprep.subr.bf16.mxu1 %v2506_v0  ;;  %v62_v22 = vld [vmem:[%s2993_s7 + $0x78] sm:$0xff] }
  0x3b   :  { %2227 = vmatpush3.bf16.msra.mxu0 %v2224_v55  ;;  %1898 = vmatprep.mubr.msk.f32.mxu0 %vm104_vm1, %v294_v61  ;;  %v2789_v23 = vpack.c.bf16 %v62_v22, %v61_v21 }
  0x3c   :  { %2229 = vmatprep.subr.bf16.mxu0 %v2228_v60 }
  0x3d   :  { %2250 = vmatpush3.bf16.msra.mxu1 %v2760_v14 }
  0x3e   :  { %2251 = vmatprep.subr.bf16.mxu1 %v2506_v0 }
  0x3f   :  { %2231 = vmatpush3.bf16.msra.mxu0 %v2228_v60 }
  0x40   :  { %2233 = vmatprep.subr.bf16.mxu0 %v2232_v1 }
  0x41   :  { %2253 = vmatpush3.bf16.msra.mxu1 %v2770_v17 }
  0x42   :  { %2254 = vmatprep.subr.bf16.mxu1 %v2506_v0 }
  0x43   :  { %2235 = vmatpush3.bf16.msra.mxu0 %v2232_v1 }
  0x45   :  { %2256 = vmatpush3.bf16.msra.mxu1 %v2780_v20 }
  0x46   :  { %1899 = vmatmul.mubr.msk.f32.vlgmr.msra.gmra.mrb[0].mxu0 %vm104_vm1, %v296_v5  ;;  %2257 = vmatprep.subr.bf16.mxu1 %v2506_v0  ;;  %v881_v5 = vld [vmem:[#allocation2 + $0x80] sm:$0xff] }
  0x47   :  { %1901 = vmatprep.mubr.msk.f32.mxu0 %vm104_vm1, %v299_v7  ;;  %v883_v7 = vld [vmem:[#allocation2 + $0x90] sm:$0xff] }
  0x48   :  { %v2288_v10 = vpack.c.bf16 %v884_v9, %v883_v7 }
  0x49   :  { %2259 = vmatpush3.bf16.msra.mxu1 %v2789_v23 }
  0x4a   :  { %1902 = vmatmul.mubr.msk.f32.gmra.mrb[2].mxu0 %vm104_vm1, %v301_v8  ;;  %1939 = vmatprep.subr.mxu1 %v2508_v24  ;;  %v2284_v8 = vpack.c.bf16 %v882_v6, %v881_v5 }
  0x4c   :  { %2285 = vmatprep.subr.bf16.mxu0 %v2284_v8 }
  0x4d   :  { %2287 = vmatpush3.bf16.msra.mxu0 %v2284_v8 }
  0x4e   :  { %2289 = vmatprep.subr.bf16.mxu0 %v2288_v10 }
  0x51   :  { %2291 = vmatpush3.bf16.msra.mxu0 %v2288_v10  ;;  %v848_v10 = vld [vmem:[#allocation2 + $0x10] sm:$0xff] }
  0x52   :  { %2293 = vmatprep.subr.bf16.mxu0 %v2292_v15 }
  0x55   :  { %2295 = vmatpush3.bf16.msra.mxu0 %v2292_v15 }
  0x56   :  { %2297 = vmatprep.subr.bf16.mxu0 %v2296_v19 }
  0x59   :  { %2299 = vmatpush3.bf16.msra.mxu0 %v2296_v19 }
 0x119   :  { %v1900_v25 = vpop.f32.mrb[0].mxu0 }
 0x11a   :  { %v385_v27 = vpop.f32.mrb[1].mxu0 }
 0x11b   :  { %v408_v28 = vadd.f32 %v1900_v25, %v385_v27 }
 0x11d   :  { %v1903_v29 = vpop.f32.mrb[2].mxu0 }
 0x11e   :  { %v395_v30 = vpop.f32.mrb[3].mxu0 }
 0x11f   :  { %v409_v31 = vadd.f32 %v408_v28, %v395_v30  ;;  %v654_v28 = vld [vmem:[%s2989_s3] sm:$0x1] }
 0x121   :  { %v410_v32 = vadd.f32 %v1903_v29, %v409_v31  ;;  %v731_v31 = vld [vmem:[%s2990_s4] sm:$0x1] }
 0x123   :  { %v411_v33 = vrot.slane %v410_v32, 4 }
 0x125   :  { %v412_v35 = vadd.f32 %v411_v33, %v410_v32  ;;  %v889_v32 = vld [vmem:[#allocation2 + $0xc0] sm:$0xff]  ;;  %v890_v33 = vld [vmem:[#allocation2 + $0xc8] sm:$0xff] }
 0x127   :  { %v413_v36 = vrot.slane %v412_v35, 2 }
 0x129   :  { %v414_v37 = vadd.f32 %v413_v36, %v412_v35  ;;  %v2300_v35 = vpack.c.bf16 %v890_v33, %v889_v32  ;;  %v891_v36 = vld [vmem:[#allocation2 + $0xd0] sm:$0xff] }
 0x12b   :  { %v415_v38 = vrot.slane %v414_v37, 1  ;;  %2301 = vmatprep.subr.bf16.mxu0 %v2300_v35 }
 0x12c   :  { %2303 = vmatpush3.bf16.msra.mxu0 %v2300_v35 }
 0x12d   :  { %v416_v39 = vadd.f32 %v415_v38, %v414_v37  ;;  %v892_v37 = vld [vmem:[#allocation2 + $0xd8] sm:$0xff] }
 0x12e   :  { %v2304_v38 = vpack.c.bf16 %v892_v37, %v891_v36 }
 0x12f   :  { %1937 = vmatmul.mubr.f32.vlgmr.msra.gmra.mrb[0].mxu1 %v416_v39  ;;  %v893_v39 = vld [vmem:[#allocation2 + $0xe0] sm:$0xff] }
 0x130   :  { %1940 = vmatpush3.msra.mxu1 %v2799_v40  ;;  %1941 = vmatprep.mubr.msk.f32.mxu1 %vm2507_vm3, %v2508_v24 }
 0x131   :  { %2260 = vmatprep.subr.bf16.mxu1 %v2506_v0  ;;  %2305 = vmatprep.subr.bf16.mxu0 %v2304_v38 }
 0x132   :  { %2307 = vmatpush3.bf16.msra.mxu0 %v2304_v38  ;;  %v850_v38 = vld [vmem:[#allocation2 + $0x20] sm:$0xff] }
 0x202   :  { %v483_v41 = vpop.f32.mrb[0].mxu1 }
 0x203   :  { %v487_v43 = vmul.f32 0.001953125, %v483_v41  ;;  %v1938_v44 = vpop.f32.mrb[1].mxu1  ;;  %v894_v41 = vld [vmem:[#allocation2 + $0xe8] sm:$0xff] }
 0x204   :  { %v895_v44 = vld [vmem:[#allocation2 + $0xf0] sm:$0xff] }
 0x205   :  { %1942 = vmatmul.mubr.msk.f32.vlgmr.msra.gmra.mrb[2].mxu1 %vm488_vm4, %v487_v43  ;;  %v2308_v43 = vpack.c.bf16 %v894_v41, %v893_v39  ;;  %v2312_v46 = vpack.c.bf16 %v896_v45, %v895_v44  ;;  %v851_v39 = vld [vmem:[#allocation2 + $0x28] sm:$0xff] }
 0x206   :  { %2262 = vmatpush3.bf16.msra.mxu1 %v2644_v26  ;;  %1976 = vmatprep.mubr.msk.f32.mxu1 %vm2507_vm3, %v2508_v24 }
 0x207   :  { %2263 = vmatprep.subr.bf16.mxu1 %v2506_v0  ;;  %2309 = vmatprep.subr.bf16.mxu0 %v2308_v43 }
 0x208   :  { %2311 = vmatpush3.bf16.msra.mxu0 %v2308_v43 }
 0x209   :  { %2313 = vmatprep.subr.bf16.mxu0 %v2312_v46 }
 0x20a   :  { %2265 = vmatpush3.bf16.msra.mxu1 %v2661_v34 }
 0x20b   :  { %2266 = vmatprep.subr.bf16.mxu1 %v2506_v0 }
 0x20c   :  { %2315 = vmatpush3.bf16.msra.mxu0 %v2312_v46 }
 0x20e   :  { %2268 = vmatpush3.bf16.msra.mxu1 %v2677_v42 }
 0x20f   :  { %2269 = vmatprep.subr.bf16.mxu1 %v2506_v0 }
 0x212   :  { %2271 = vmatpush3.bf16.msra.mxu1 %v2750_v11 }
 0x213   :  { %2272 = vmatprep.subr.bf16.mxu1 %v2506_v0 }
 0x216   :  { %2274 = vmatpush3.bf16.msra.mxu1 %v2760_v14 }
 0x217   :  { %2275 = vmatprep.subr.bf16.mxu1 %v2506_v0 }
 0x21a   :  { %2277 = vmatpush3.bf16.msra.mxu1 %v2770_v17 }
 0x21b   :  { %2278 = vmatprep.subr.bf16.mxu1 %v2506_v0 }
 0x21e   :  { %2280 = vmatpush3.bf16.msra.mxu1 %v2780_v20 }
 0x21f   :  { %2281 = vmatprep.subr.bf16.mxu1 %v2506_v0 }
 0x222   :  { %2283 = vmatpush3.bf16.msra.mxu1 %v2789_v23 }
 0x223   :  { %1979 = vmatprep.subr.mxu1 %v2508_v24 }
 0x2d8   :  { %v558_v48 = vpop.f32.mrb[2].mxu1 }
 0x2d9   :  { %v565_v49 = vrot.slane %v558_v48, %v2824_v47  ;;  %v1943_v50 = vpop.f32.mrb[3].mxu1  ;;  %v846_v48 = vld [vmem:[#allocation2] sm:$0xff] }
 0x2db   :  { %v2827_v51 = vsub.f32 %v385_v27, %v565_v49  ;;  %v2829_v52 = vsub.f32 %v1900_v25, %v565_v49  ;;  %v2831_v53 = vsub.f32 %v395_v30, %v565_v49  ;;  %v2833_v54 = vsub.f32 %v1903_v29, %v565_v49  ;;  %v847_v49 = vld [vmem:[#allocation2 + $0x8] sm:$0xff] }
 0x2dc   :  { %v2316_v50 = vpack.c.bf16 %v847_v49, %v846_v48 }
 0x2dd   :  { %v570_v55 = vmul.f32 %v2827_v51, %v2827_v51  ;;  %v571_v56 = vmul.f32 %v2829_v52, %v2829_v52  ;;  %v572_v57 = vmul.f32 %v2831_v53, %v2831_v53  ;;  %v573_v59 = vmul.f32 %v2833_v54, %v2833_v54 }
 0x2de   :  { %2317 = vmatprep.subr.bf16.mxu0 %v2316_v50 }
 0x2df   :  { %v574_v58 = vadd.f32 %v571_v56, %v570_v55 }
 0x2e1   :  { %v575_v60 = vadd.f32 %v574_v58, %v572_v57 }
 0x2e3   :  { %v576_v61 = vadd.f32 %v575_v60, %v573_v59 }
 0x2e5   :  { %v577_v62 = vrot.slane %v576_v61, 4 }
 0x2e7   :  { %v578_v63 = vadd.f32 %v577_v62, %v576_v61 }
 0x2e9   :  { %v579_v1 = vrot.slane %v578_v63, 2 }
 0x2eb   :  { %v580_v2 = vadd.f32 %v579_v1, %v578_v63 }
 0x2ed   :  { %v581_v3 = vrot.slane %v580_v2, 1 }
 0x2ef   :  { %v582_v4 = vadd.f32 %v581_v3, %v580_v2 }
 0x2f1   :  { %1977 = vmatmul.mubr.f32.vlgmr.msra.gmra.mrb[4].mxu1 %v582_v4 }
 0x2f2   :  { %1980 = vmatpush3.msra.mxu1 %v2799_v40  ;;  %1981 = vmatprep.mubr.msk.f32.mxu1 %vm2507_vm3, %v2508_v24 }
 0x2f3   :  { %1984 = vmatprep.subr.mxu1 %v2508_v24 }
 0x3c4   :  { %v649_v21 = vpop.f32.mrb[4].mxu1 }
 0x3c5   :  { %v653_v22 = vmul.f32 0.001953125, %v649_v21  ;;  %v1978_v25 = vpop.f32.mrb[5].mxu1 }
 0x3c7   :  { %v655_v27 = vadd.f32 1e-05, %v653_v22 }
 0x3c9   :  { %2451 = vrsqrt.f32 %v655_v27 }
 0x3d3   :  { %v2452_v29 = vpop.eup %2451 }
 0x3d4   :  { %v657_v30 = vmul.f32 %v2452_v29, %v654_v28 }
 0x3d6   :  { %1982 = vmatmul.mubr.msk.f32.vlgmr.msra.gmra.mrb[6].mxu1 %vm488_vm4, %v657_v30 }
 0x3d7   :  { %1985 = vmatpush3.msra.mxu1 %v2799_v40  ;;  %1986 = vmatprep.mubr.msk.f32.mxu1 %vm2507_vm3, %v2508_v24 }
 0x3d8   :  { %2380 = vmatprep.subr.bf16.mxu1 %v2506_v0 }
 0x3da   :  { %1987 = vmatmul.mubr.msk.f32.vlgmr.msra.gmra.mrb[8].mxu1 %vm488_vm4, %v731_v31 }
 0x3db   :  { %2382 = vmatpush3.bf16.msra.mxu1 %v2644_v26  ;;  %2135 = vmatprep.mubr.msk.f32.mxu1 %vm2507_vm3, %v2508_v24 }
 0x3dc   :  { %2383 = vmatprep.subr.bf16.mxu1 %v2506_v0 }
 0x3df   :  { %2385 = vmatpush3.bf16.msra.mxu1 %v2661_v34 }
 0x3e0   :  { %2386 = vmatprep.subr.bf16.mxu1 %v2506_v0 }
 0x3e3   :  { %2388 = vmatpush3.bf16.msra.mxu1 %v2677_v42 }
 0x3e4   :  { %2389 = vmatprep.subr.bf16.mxu1 %v2506_v0 }
 0x3e7   :  { %2391 = vmatpush3.bf16.msra.mxu1 %v2750_v11 }
 0x3e8   :  { %2392 = vmatprep.subr.bf16.mxu1 %v2506_v0 }
 0x3eb   :  { %2394 = vmatpush3.bf16.msra.mxu1 %v2760_v14 }
 0x3ec   :  { %2395 = vmatprep.subr.bf16.mxu1 %v2506_v0 }
 0x3ef   :  { %2397 = vmatpush3.bf16.msra.mxu1 %v2770_v17 }
 0x3f0   :  { %2398 = vmatprep.subr.bf16.mxu1 %v2506_v0 }
 0x3f3   :  { %2400 = vmatpush3.bf16.msra.mxu1 %v2780_v20 }
 0x3f4   :  { %2401 = vmatprep.subr.bf16.mxu1 %v2506_v0 }
 0x3f7   :  { %2403 = vmatpush3.bf16.msra.mxu1 %v2789_v23 }
 0x3f8   :  { %2138 = vmatprep.subr.mxu1 %v2508_v24 }
 0x4a9   :  { %v727_v55 = vpop.f32.mrb[6].mxu1 }
 0x4aa   :  { %v808_v56 = vrot.slane %v727_v55, %v2824_v47  ;;  %v1983_v57 = vpop.f32.mrb[7].mxu1 }
 0x4ab   :  { %v2324_v57 = vpack.c.bf16 %v851_v39, %v850_v38 }
 0x4ac   :  { %v809_v58 = vmul.f32 %v808_v56, %v2827_v51  ;;  %v810_v60 = vmul.f32 %v808_v56, %v2829_v52  ;;  %v811_v61 = vmul.f32 %v808_v56, %v2831_v53  ;;  %v812_v62 = vmul.f32 %v808_v56, %v2833_v54  ;;  %v849_v51 = vld [vmem:[#allocation2 + $0x18] sm:$0xff] }
 0x4ad   :  { %v801_v59 = vpop.f32.mrb[8].mxu1  ;;  %v2320_v54 = vpack.c.bf16 %v849_v51, %v848_v10  ;;  %v1082_v10 = vld [vmem:[#allocation2 + $0x100] sm:$0xff]  ;;  %v1083_v51 = vld [vmem:[#allocation2 + $0x108] sm:$0xff] }
 0x4ae   :  { %v816_v63 = vrot.slane %v801_v59, %v2824_v47  ;;  %v1988_v1 = vpop.f32.mrb[9].mxu1  ;;  %v852_v59 = vld [vmem:[#allocation2 + $0x30] sm:$0xff] }
 0x4af   :  { %v856_v1 = vld [vmem:[#allocation2 + $0x50] sm:$0xff] }
 0x4b0   :  { %v817_v2 = vadd.f32 %v816_v63, %v809_v58  ;;  %v818_v3 = vadd.f32 %v816_v63, %v810_v60  ;;  %v819_v4 = vadd.f32 %v816_v63, %v811_v61  ;;  %v820_v5 = vadd.f32 %v816_v63, %v812_v62  ;;  %v853_v60 = vld [vmem:[#allocation2 + $0x38] sm:$0xff]  ;;  %v854_v61 = vld [vmem:[#allocation2 + $0x40] sm:$0xff]  ;;  %v855_v62 = vld [vmem:[#allocation2 + $0x48] sm:$0xff] }
 0x4b1   :  { %v2332_v63 = vpack.c.bf16 %v855_v62, %v854_v61 }
 0x4b2   :  { %v821_v6 = vmax.f32 %v817_v2, 0.0  ;;  %v822_v7 = vmax.f32 %v818_v3, 0.0  ;;  %v823_v8 = vmax.f32 %v819_v4, 0.0  ;;  %v824_v9 = vmax.f32 %v820_v5, 0.0  ;;  %v857_v2 = vld [vmem:[#allocation2 + $0x58] sm:$0xff]  ;;  %v858_v4 = vld [vmem:[#allocation2 + $0x60] sm:$0xff] }
 0x4b3   :  { %v2336_v3 = vpack.c.bf16 %v857_v2, %v856_v1  ;;  %v859_v5 = vld [vmem:[#allocation2 + $0x68] sm:$0xff] }
 0x4b4   :  { %v830_v12 = vrot.slane %v821_v6, 7  ;;  %v831_v52 = vrot.slane %v822_v7, 7  ;;  %v2883_v13 = vrot.slane %v823_v8, 7  ;;  %v834_v53 = vrot.slane %v824_v9, 7  ;;  %v860_v7 = vld [vmem:[#allocation2 + $0x70] sm:$0xff]  ;;  %v861_v8 = vld [vmem:[#allocation2 + $0x78] sm:$0xff] }
 0x4b5   :  { %v2340_v6 = vpack.c.bf16 %v859_v5, %v858_v4  ;;  %v2344_v9 = vpack.c.bf16 %v861_v8, %v860_v7 }
 0x4b6   :  { %v2886_v15 = vsel %vm829_vm5, %v830_v12, %v831_v52  ;;  %v842_v16 = vsel %vm829_vm5, 0.0, %v830_v12  ;;  %v844_v18 = vsel %vm829_vm5, %v831_v52, 0.0  ;;  %v2892_v19 = vsel %vm829_vm5, %v2883_v13, %v834_v53  ;;  %v1084_v52 = vld [vmem:[#allocation2 + $0x110] sm:$0xff] }
 0x4b7   :  { %v866_v21 = vrot.slane %v842_v16, 1  ;;  %v867_v22 = vrot.slane %v2886_v15, 1  ;;  %v869_v25 = vrot.slane %v844_v18, 1  ;;  %v843_v27 = vsel %vm829_vm5, 0.0, %v2883_v13 }
 0x4b8   :  { %v871_v28 = vrot.slane %v843_v27, 1  ;;  %v872_v29 = vrot.slane %v2892_v19, 1  ;;  %v845_v30 = vsel %vm829_vm5, %v834_v53, 0.0  ;;  %v1067_v31 = vrot.slane %v842_v16, 2  ;;  %v1085_v53 = vld [vmem:[#allocation2 + $0x118] sm:$0xff]  ;;  %v1086_v16 = vld [vmem:[#allocation2 + $0x120] sm:$0xff] }
 0x4b9   :  { %v868_v32 = vsel %vm84_vm0, %v866_v21, %v867_v22  ;;  %v870_v33 = vsel %vm84_vm0, %v867_v22, %v869_v25  ;;  %v874_v35 = vrot.slane %v845_v30, 1  ;;  %v1068_v36 = vrot.slane %v2886_v15, 2  ;;  %v1088_v22 = vld [vmem:[#allocation2 + $0x130] sm:$0xff]  ;;  %v1089_v25 = vld [vmem:[#allocation2 + $0x138] sm:$0xff] }
 0x4ba   :  { %2021 = vmatprep.mubr.f32.mxu0 %v868_v32  ;;  %v873_v37 = vsel %vm84_vm0, %v871_v28, %v872_v29  ;;  %v1070_v41 = vrot.slane %v844_v18, 2  ;;  %v1072_v43 = vrot.slane %v843_v27, 2  ;;  %v1073_v44 = vrot.slane %v2892_v19, 2  ;;  %v1087_v18 = vld [vmem:[#allocation2 + $0x128] sm:$0xff]  ;;  %v1090_v28 = vld [vmem:[#allocation2 + $0x140] sm:$0xff] }
 0x4bb   :  { %2022 = vmatmul.mubr.f32.vlgmr.msra.gmra.mrb[4].mxu0 %v870_v33  ;;  %v875_v45 = vsel %vm84_vm0, %v872_v29, %v874_v35  ;;  %v1069_v46 = vsel %vm291_vm2, %v1067_v31, %v1068_v36  ;;  %v1075_v48 = vrot.slane %v845_v30, 2  ;;  %v2356_v21 = vpack.c.bf16 %v1087_v18, %v1086_v16  ;;  %v1091_v29 = vld [vmem:[#allocation2 + $0x148] sm:$0xff]  ;;  %v1092_v30 = vld [vmem:[#allocation2 + $0x150] sm:$0xff]  ;;  %v1093_v31 = vld [vmem:[#allocation2 + $0x158] sm:$0xff] }
 0x4bc   :  { %2319 = vmatpush3.bf16.msra.mxu0 %v2316_v50  ;;  %2024 = vmatprep.mubr.f32.mxu0 %v873_v37  ;;  %v2907_v49 = vsel %vm291_vm2, %v1068_v36, %v1070_v41  ;;  %v2910_v55 = vsel %vm291_vm2, %v1072_v43, %v1073_v44  ;;  %v2328_v50 = vpack.c.bf16 %v853_v60, %v852_v59  ;;  %v1094_v32 = vld [vmem:[#allocation2 + $0x160] sm:$0xff]  ;;  %v1095_v33 = vld [vmem:[#allocation2 + $0x168] sm:$0xff]  ;;  %v1097_v36 = vld [vmem:[#allocation2 + $0x178] sm:$0xff] }
 0x4bd   :  { %2321 = vmatprep.subr.bf16.mxu0 %v2320_v54  ;;  %v2918_v58 = vsel %vm291_vm2, %v1073_v44, %v1075_v48  ;;  %v2360_v27 = vpack.c.bf16 %v1089_v25, %v1088_v22  ;;  %v2372_v35 = vpack.c.bf16 %v1095_v33, %v1094_v32  ;;  %v1509_v16 = vld [vmem:[%s2992_s6] sm:$0x1] }
 0x4bf   :  { %2025 = vmatmul.mubr.f32.gmra.mrb[6].mxu0 %v875_v45 }
 0x4c0   :  { %2323 = vmatpush3.bf16.msra.mxu0 %v2320_v54  ;;  %2059 = vmatprep.mubr.msk.f32.mxu0 %vm2913_vm6, %v830_v12  ;;  %v2348_v12 = vpack.c.bf16 %v1083_v51, %v1082_v10  ;;  %v2352_v54 = vpack.c.bf16 %v1085_v53, %v1084_v52  ;;  %v1432_v52 = vld [vmem:[%s2991_s5] sm:$0x1]  ;;  %s2509_s5 = smov [#allocation5]  }
 0x4c1   :  { %2325 = vmatprep.subr.bf16.mxu0 %v2324_v57  ;;  %s1612_s14 = sshll.u32 %s2509_s5, 4  ;;  %s1613_s14 = int_to_ptr.vmem [resolvable:$true] %s1612_s14 }
 0x4c2   :  { %s2477_s6 = scalar_lea.vmem %s1613_s14, 512  ;;  %p2482_p9 = scmp.lt.s32.totalorder %s1613_s14, %s1613_s14 }
 0x4c3   :  { %p2478_p8 = scmp.ne.s32.totalorder %s1613_s14, %s2477_s6  ;;  %p2483_p10 = scmp.lt.s32.totalorder %s2477_s6, %s2477_s6 }
 0x4c4   :  { %2327 = vmatpush3.bf16.msra.mxu0 %v2324_v57 }
 0x4c5   :  { %2329 = vmatprep.subr.bf16.mxu0 %v2328_v50  ;;  %p2484_p11 = por %p2483_p10, %p2482_p9 }
 0x4c7   :  { %p2485_p12 = pnand %p2484_p11, %p2478_p8 }
 0x4c8   :  { %2331 = vmatpush3.bf16.msra.mxu0 %v2328_v50 }
 0x4c9   :  { %2333 = vmatprep.subr.bf16.mxu0 %v2332_v63 }
 0x4cc   :  { %2335 = vmatpush3.bf16.msra.mxu0 %v2332_v63 }
 0x4cd   :  { %2337 = vmatprep.subr.bf16.mxu0 %v2336_v3 }
 0x4d0   :  { %2339 = vmatpush3.bf16.msra.mxu0 %v2336_v3 }
 0x4d1   :  { %2341 = vmatprep.subr.bf16.mxu0 %v2340_v6 }
 0x4d4   :  { %2343 = vmatpush3.bf16.msra.mxu0 %v2340_v6 }
 0x4d5   :  { %2345 = vmatprep.subr.bf16.mxu0 %v2344_v9 }
 0x4d8   :  { %2347 = vmatpush3.bf16.msra.mxu0 %v2344_v9 }
 0x4d9   :  { %2349 = vmatprep.subr.bf16.mxu0 %v2348_v12 }
 0x4db   :  { %2060 = vmatmul.mubr.f32.vlgmr.msra.gmra.mrb[4].mxu0 %v2886_v15  ;;  %v2364_v15 = vpack.c.bf16 %v1091_v29, %v1090_v28 }
 0x4dc   :  { %2062 = vmatprep.mubr.msk.f32.mxu0 %vm2913_vm6, %v2883_v13  ;;  %2351 = vmatpush3.bf16.msra.mxu0 %v2348_v12  ;;  %v2368_v13 = vpack.c.bf16 %v1093_v31, %v1092_v30 }
 0x4dd   :  { %2353 = vmatprep.subr.bf16.mxu0 %v2352_v54 }
 0x4df   :  { %2063 = vmatmul.mubr.f32.gmra.mrb[6].mxu0 %v2892_v19  ;;  %v1096_v19 = vld [vmem:[#allocation2 + $0x170] sm:$0xff] }
 0x4e0   :  { %2355 = vmatpush3.bf16.msra.mxu0 %v2352_v54  ;;  %2097 = vmatprep.mubr.f32.mxu0 %v1069_v46  ;;  %v2376_v37 = vpack.c.bf16 %v1097_v36, %v1096_v19 }
 0x4e1   :  { %2357 = vmatprep.subr.bf16.mxu0 %v2356_v21 }
 0x4e4   :  { %2359 = vmatpush3.bf16.msra.mxu0 %v2356_v21 }
 0x4e5   :  { %2361 = vmatprep.subr.bf16.mxu0 %v2360_v27 }
 0x4e8   :  { %2363 = vmatpush3.bf16.msra.mxu0 %v2360_v27 }
 0x4e9   :  { %2365 = vmatprep.subr.bf16.mxu0 %v2364_v15 }
 0x4ec   :  { %2367 = vmatpush3.bf16.msra.mxu0 %v2364_v15 }
 0x4ed   :  { %2369 = vmatprep.subr.bf16.mxu0 %v2368_v13 }
 0x4f0   :  { %2371 = vmatpush3.bf16.msra.mxu0 %v2368_v13 }
 0x4f1   :  { %2373 = vmatprep.subr.bf16.mxu0 %v2372_v35 }
 0x4f4   :  { %2375 = vmatpush3.bf16.msra.mxu0 %v2372_v35 }
 0x4f5   :  { %2377 = vmatprep.subr.bf16.mxu0 %v2376_v37 }
 0x4f8   :  { %2379 = vmatpush3.bf16.msra.mxu0 %v2376_v37 }
 0x4fb   :  { %2098 = vmatmul.mubr.f32.vlgmr.msra.gmra.mrb[4].mxu0 %v2907_v49 }
 0x4fc   :  { %2100 = vmatprep.mubr.f32.mxu0 %v2910_v55 }
 0x4ff   :  { %2101 = vmatmul.mubr.f32.gmra.mrb[6].mxu0 %v2918_v58 }
 0x5ce   :  { %v2099_v38 = vpop.f32.mrb[4].mxu0 }
 0x5cf   :  { %v1164_v39 = vpop.f32.mrb[5].mxu0 }
 0x5d0   :  { %v1187_v41 = vadd.f32 %v2099_v38, %v1164_v39 }
 0x5d2   :  { %v2102_v43 = vpop.f32.mrb[6].mxu0 }
 0x5d3   :  { %v1174_v44 = vpop.f32.mrb[7].mxu0 }
 0x5d4   :  { %v1188_v45 = vadd.f32 %v1187_v41, %v1174_v44 }
 0x5d6   :  { %v1189_v46 = vadd.f32 %v2102_v43, %v1188_v45 }
 0x5d8   :  { %v1190_v48 = vrot.slane %v1189_v46, 4 }
 0x5da   :  { %v1191_v56 = vadd.f32 %v1190_v48, %v1189_v46 }
 0x5dc   :  { %v1192_v57 = vrot.slane %v1191_v56, 2 }
 0x5de   :  { %v1193_v59 = vadd.f32 %v1192_v57, %v1191_v56 }
 0x5e0   :  { %v1194_v60 = vrot.slane %v1193_v59, 1 }
 0x5e2   :  { %v1195_v50 = vadd.f32 %v1194_v60, %v1193_v59 }
 0x5e4   :  { %2136 = vmatmul.mubr.f32.vlgmr.msra.gmra.mrb[10].mxu1 %v1195_v50 }
 0x5e5   :  { %2139 = vmatpush3.msra.mxu1 %v2799_v40  ;;  %2140 = vmatprep.mubr.msk.f32.mxu1 %vm2507_vm3, %v2508_v24 }
 0x5e6   :  { %2404 = vmatprep.subr.bf16.mxu1 %v2506_v0 }
 0x6b7   :  { %v1262_v49 = vpop.f32.mrb[10].mxu1 }
 0x6b8   :  { %v1266_v55 = vmul.f32 0.001953125, %v1262_v49  ;;  %v2137_v58 = vpop.f32.mrb[11].mxu1 }
 0x6ba   :  { %2141 = vmatmul.mubr.msk.f32.vlgmr.msra.gmra.mrb[12].mxu1 %vm488_vm4, %v1266_v55 }
 0x6bb   :  { %2406 = vmatpush3.bf16.msra.mxu1 %v2644_v26  ;;  %2175 = vmatprep.mubr.msk.f32.mxu1 %vm2507_vm3, %v2508_v24 }
 0x6bc   :  { %2407 = vmatprep.subr.bf16.mxu1 %v2506_v0 }
 0x6bf   :  { %2409 = vmatpush3.bf16.msra.mxu1 %v2661_v34 }
 0x6c0   :  { %2410 = vmatprep.subr.bf16.mxu1 %v2506_v0 }
 0x6c3   :  { %2412 = vmatpush3.bf16.msra.mxu1 %v2677_v42 }
 0x6c4   :  { %2413 = vmatprep.subr.bf16.mxu1 %v2506_v0 }
 0x6c7   :  { %2415 = vmatpush3.bf16.msra.mxu1 %v2750_v11 }
 0x6c8   :  { %2416 = vmatprep.subr.bf16.mxu1 %v2506_v0 }
 0x6cb   :  { %2418 = vmatpush3.bf16.msra.mxu1 %v2760_v14 }
 0x6cc   :  { %2419 = vmatprep.subr.bf16.mxu1 %v2506_v0 }
 0x6cf   :  { %2421 = vmatpush3.bf16.msra.mxu1 %v2770_v17 }
 0x6d0   :  { %2422 = vmatprep.subr.bf16.mxu1 %v2506_v0 }
 0x6d3   :  { %2424 = vmatpush3.bf16.msra.mxu1 %v2780_v20 }
 0x6d4   :  { %2425 = vmatprep.subr.bf16.mxu1 %v2506_v0 }
 0x6d7   :  { %2427 = vmatpush3.bf16.msra.mxu1 %v2789_v23 }
 0x6d8   :  { %2178 = vmatprep.subr.mxu1 %v2508_v24 }
 0x78d   :  { %v1336_v26 = vpop.f32.mrb[12].mxu1 }
 0x78e   :  { %v1343_v34 = vrot.slane %v1336_v26, %v2824_v47  ;;  %v2142_v42 = vpop.f32.mrb[13].mxu1 }
 0x790   :  { %v1344_v11 = vsub.f32 %v1164_v39, %v1343_v34  ;;  %v1345_v14 = vsub.f32 %v2099_v38, %v1343_v34  ;;  %v1346_v61 = vsub.f32 %v1174_v44, %v1343_v34  ;;  %v1347_v62 = vsub.f32 %v2102_v43, %v1343_v34 }
 0x792   :  { %v1348_v63 = vmul.f32 %v1344_v11, %v1344_v11  ;;  %v1349_v17 = vmul.f32 %v1345_v14, %v1345_v14  ;;  %v1350_v1 = vmul.f32 %v1346_v61, %v1346_v61  ;;  %v1351_v3 = vmul.f32 %v1347_v62, %v1347_v62 }
 0x794   :  { %v1352_v2 = vadd.f32 %v1349_v17, %v1348_v63 }
 0x796   :  { %v1353_v20 = vadd.f32 %v1352_v2, %v1350_v1 }
 0x798   :  { %v1354_v4 = vadd.f32 %v1353_v20, %v1351_v3 }
 0x79a   :  { %v1355_v0 = vrot.slane %v1354_v4, 4 }
 0x79c   :  { %v1356_v5 = vadd.f32 %v1355_v0, %v1354_v4 }
 0x79e   :  { %v1357_v23 = vrot.slane %v1356_v5, 2 }
 0x7a0   :  { %v1358_v6 = vadd.f32 %v1357_v23, %v1356_v5 }
 0x7a2   :  { %v1359_v7 = vrot.slane %v1358_v6, 1 }
 0x7a4   :  { %v1360_v8 = vadd.f32 %v1359_v7, %v1358_v6 }
 0x7a6   :  { %2176 = vmatmul.mubr.f32.vlgmr.msra.gmra.mrb[14].mxu1 %v1360_v8 }
 0x7a7   :  { %2179 = vmatpush3.msra.mxu1 %v2799_v40  ;;  %2180 = vmatprep.mubr.msk.f32.mxu1 %vm2507_vm3, %v2508_v24 }
 0x7a8   :  { %2183 = vmatprep.subr.mxu1 %v2508_v24 }
 0x879   :  { %v1427_v9 = vpop.f32.mrb[14].mxu1 }
 0x87a   :  { %v1431_v10 = vmul.f32 0.001953125, %v1427_v9  ;;  %v2177_v51 = vpop.f32.mrb[15].mxu1 }
 0x87c   :  { %v1433_v12 = vadd.f32 1e-05, %v1431_v10 }
 0x87e   :  { %2453 = vrsqrt.f32 %v1433_v12 }
 0x888   :  { %v2454_v53 = vpop.eup %2453 }
 0x889   :  { %v1435_v54 = vmul.f32 %v2454_v53, %v1432_v52 }
 0x88b   :  { %2181 = vmatmul.mubr.msk.f32.vlgmr.msra.gmra.mrb[16].mxu1 %vm488_vm4, %v1435_v54 }
 0x88c   :  { %2184 = vmatpush3.msra.mxu1 %v2799_v40  ;;  %2185 = vmatprep.mubr.msk.f32.mxu1 %vm2507_vm3, %v2508_v24 }
 0x88f   :  { %2186 = vmatmul.mubr.msk.f32.vlgmr.msra.gmra.mrb[18].mxu1 %vm488_vm4, %v1509_v16 }
 0x95e   :  { %v1505_v18 = vpop.f32.mrb[16].mxu1 }
 0x95f   :  { %v1586_v21 = vrot.slane %v1505_v18, %v2824_v47  ;;  %v2182_v22 = vpop.f32.mrb[17].mxu1 }
 0x961   :  { %v1587_v25 = vmul.f32 %v1586_v21, %v1344_v11  ;;  %v1588_v28 = vmul.f32 %v1586_v21, %v1345_v14  ;;  %v1589_v29 = vmul.f32 %v1586_v21, %v1346_v61  ;;  %v1590_v15 = vmul.f32 %v1586_v21, %v1347_v62 }
 0x962   :  { %v1579_v27 = vpop.f32.mrb[18].mxu1 }
 0x963   :  { %v1594_v40 = vrot.slane %v1579_v27, %v2824_v47  ;;  %v2187_v30 = vpop.f32.mrb[19].mxu1 }
 0x965   :  { %v1595_v24 = vadd.f32 %v1594_v40, %v1587_v25  ;;  %v1596_v31 = vadd.f32 %v1594_v40, %v1588_v28  ;;  %v1597_v13 = vadd.f32 %v1594_v40, %v1589_v29  ;;  %v1598_v32 = vadd.f32 %v1594_v40, %v1590_v15 }
 0x967   :  { %v1599_v33 = vmax.f32 %v1595_v24, 0.0  ;;  %v1600_v35 = vmax.f32 %v1596_v31, 0.0  ;;  %v1601_v19 = vmax.f32 %v1597_v13, 0.0  ;;  %v1602_v36 = vmax.f32 %v1598_v32, 0.0 }
 0x969   :  { %1603 = vst [vmem:[#allocation5] sm:$0xff] %v1599_v33  ;;  %1604 = vst [vmem:[#allocation5 + $0x8] sm:$0xff] %v1600_v35 }
 0x96a   :  { %1605 = vst [vmem:[#allocation5 + $0x10] sm:$0xff] %v1601_v19  ;;  %1606 = vst [vmem:[#allocation5 + $0x18] sm:$0xff] %v1602_v36 }
 0x96b   :  { %2488 = shalt.err (!%p2485_p12)
}
 0x96c   :  { %s2489_s17 = scalar_lea.hbm %s2995_s9, 512 }
 0x96d   :  { %p2490_p13 = scmp.ne.s32.totalorder %s2995_s9, %s2489_s17  ;;  %p2493_p0 = scmp.lt.u32.totalorder %s2489_s17, %s2995_s9 }
 0x96f   :  { %p2495_p1 = pnand %p2493_p0, %p2490_p13 }
 0x971   :  { %2498 = shalt.err (!%p2495_p1)
}
 0x972   :  { %1618 = dma.vmem_to_hbm [thread:$0]  %s1613_s14, 512, %s2995_s9, [#allocation4], %s2504_s19, %s2504_s19, %s2505_s20  }
 0x973   :  { %2501 = dma.done.wait [#allocation4], 512  }
 0x974   :  { %2502 = vsyncadd [#allocation4], 4294966784 }
 0x975   :  { %1622 = vsyncpa [#allocation3], 1 }
 0x976   :  { %1623 = vsyncpa [#allocation4], 1 }

</bundles_post_ra>
